<compile_context>
chip_gen: v7x
topology: tpu7x:2x2x1
jax: 0.10.0
libtpu: 0.0.40
codegen_flags: <defaults>
</compile_context>

<pallas_src>
import jax
import jax.numpy as jnp
from jax.experimental import pallas as pl
from jax.experimental.pallas import tpu as pltpu


# ---------------------------------------------------------------------------
# Kernel bodies
# ---------------------------------------------------------------------------

def _make_single_pass_kernel(has_weights):
    """CE loss with the full class row in one (TB, C) block."""

    def kernel(logits_ref, targets_ref, *rest):
        if has_weights:
            weights_ref, out_ref = rest
        else:
            (out_ref,) = rest

        logits = logits_ref[...]                                      # (TB, C) native dtype
        t = targets_ref[...]                                          # (TB, 1) i32
        # Row max in the native dtype (exact; halves the vreg passes for bf16),
        # everything after the subtract in f32 to match the f32 reference.
        m = jnp.max(logits, axis=-1, keepdims=True).astype(jnp.float32)
        shifted = logits.astype(jnp.float32) - m                      # (TB, C) f32, <= 0
        lse = jnp.log(jnp.sum(jnp.exp(shifted), axis=-1, keepdims=True))
        cls = jax.lax.broadcasted_iota(jnp.int32, shifted.shape, 1)
        tgt = jnp.sum(jnp.where(cls == t, shifted, 0.0),
                      axis=-1, keepdims=True)                         # shifted[target]
        nll = lse - tgt                                               # (TB, 1) f32
        if has_weights:
            nll = nll * weights_ref[...]
        out_ref[...] = nll

    return kernel


def _make_online_kernel(has_weights, num_classes):
    """CE loss with the class axis chunked (online running max / running sum)."""

    def kernel(logits_ref, targets_ref, *rest):
        if has_weights:
            weights_ref, out_ref, m_scr, s_scr, t_scr = rest
        else:
            out_ref, m_scr, s_scr, t_scr = rest

        k = pl.program_id(1)

        @pl.when(k == 0)
        def _():
            m_scr[...] = jnp.full_like(m_scr, -jnp.inf)
            s_scr[...] = jnp.zeros_like(s_scr)
            t_scr[...] = jnp.zeros_like(t_scr)

        logits = logits_ref[...]                                      # (TB, TC) native
        tc = logits.shape[-1]
        t = targets_ref[...]                                          # (TB, 1) i32
        cls = k * tc + jax.lax.broadcasted_iota(jnp.int32, logits.shape, 1)
        if num_classes % tc != 0:
            # Mask the tail columns of the last chunk (they would otherwise
            # contaminate this row's max / sum with garbage).
            neg = jnp.asarray(-jnp.inf, logits.dtype)
            logits = jnp.where(cls < num_classes, logits, neg)

        m_chunk = jnp.max(logits, axis=-1, keepdims=True).astype(jnp.float32)
        logits32 = logits.astype(jnp.float32)

        # Target logit: only the chunk holding the target contributes.
        t_scr[...] += jnp.sum(jnp.where(cls == t, logits32, 0.0),
                              axis=-1, keepdims=True)

        m_old = m_scr[...]
        m_new = jnp.maximum(m_old, m_chunk)
        s_scr[...] = (s_scr[...] * jnp.exp(m_old - m_new)
                      + jnp.sum(jnp.exp(logits32 - m_new), axis=-1, keepdims=True))
        m_scr[...] = m_new

        @pl.when(k == pl.num_programs(1) - 1)
        def _():
            nll = (m_scr[...] + jnp.log(s_scr[...])) - t_scr[...]
            if has_weights:
                nll = nll * weights_ref[...]
            out_ref[...] = nll

    return kernel


# ---------------------------------------------------------------------------
# Tiling / VMEM sizing
# ---------------------------------------------------------------------------

def _pick_tiles(B, C, dtype):
    """Pick (batch_tile, class_tile, vmem_limit_bytes).

    Accounts for the double-buffered native-dtype logits stream plus ~4
    full-tile f32 temporaries inside the body, against the actual VMEM
    capacity of the current chip (v5e/v6e: 128 MiB, v7x: 64 MiB per TC).
    """
    itemsize = jnp.dtype(dtype).itemsize
    sub = 16 if itemsize == 2 else 8                 # sublane pack (bf16/f16 vs f32)

    try:
        vmem_cap = pltpu.get_tpu_info().vmem_capacity_bytes
    except Exception:
        vmem_cap = 64 << 20                          # conservative (v7x per-TC VMEM)

    # Per (row, class) element resident in VMEM per grid step:
    #   2 double-buffered copies of the native-dtype logits stream
    #   + ~4 full-tile f32 temporaries (cast / shifted / exp / mask).
    bytes_per_elem = 2 * itemsize + 4 * 4
    budget = min(vmem_cap // 3, 24 << 20)
    max_tile_elems = max(budget // bytes_per_elem, sub * 128)

    # Keep the whole class row in one block while that still allows a batch
    # tile of >= 128 rows; otherwise chunk the class axis (online softmax).
    if C * 128 <= max_tile_elems:
        tc = C
    else:
        tc = max(128, ((max_tile_elems // 128) // 128) * 128)
        if tc >= C:
            tc = C

    tb = max(sub, ((max_tile_elems // tc) // sub) * sub)
    tb = min(tb, pl.cdiv(B, sub) * sub)              # no bigger than the batch
    # Give the v7x megacore at least two batch tiles to shard.
    if B > sub and pl.cdiv(B, tb) < 2:
        tb = max(sub, pl.cdiv(pl.cdiv(B, 2), sub) * sub)

    est_bytes = tb * tc * bytes_per_elem + 8 * tb * 4
    vmem_limit = int(min(vmem_cap * 3 // 4, max(2 * est_bytes, 16 << 20)))
    return tb, tc, vmem_limit


# ---------------------------------------------------------------------------
# Wrapper
# ---------------------------------------------------------------------------

def custom_outer_loss(outputs, targets, weights=None, class_tile=None):
    """Pallas equivalent of CustomOuterLoss.forward.

    outputs: (B, C) float logits (streamed in their native dtype, e.g. bf16)
    targets: (B,)   int class indices
    weights: (B,)   float per-sample weights, or None
    class_tile: optional class-chunk override (multiple of 128, or C); mainly
                a test hook to exercise the online-softmax large-C path.
    returns: (B,)   float32 per-sample (optionally weighted) CE loss
    """
    B, C = outputs.shape
    tb, tc, vmem_limit = _pick_tiles(B, C, outputs.dtype)
    if class_tile is not None:
        tc = class_tile

    targets2d = targets.astype(jnp.int32).reshape(B, 1)
    has_weights = weights is not None
    if has_weights:
        weights2d = weights.astype(jnp.float32).reshape(B, 1)

    nb = pl.cdiv(B, tb)
    out_shape = jax.ShapeDtypeStruct((B, 1), jnp.float32)

    if tc == C:
        # Single pass: whole class row in one block; grid over batch tiles only.
        grid = (nb,)
        col = pl.BlockSpec((tb, 1), lambda i: (i, 0))
        logits_spec = pl.BlockSpec((tb, C), lambda i: (i, 0))
        kernel = _make_single_pass_kernel(has_weights)
        scratch = []
        dims = ("parallel",)
    else:
        # Large-C path: online softmax over class chunks (reduction axis last).
        nc = pl.cdiv(C, tc)
        grid = (nb, nc)
        col = pl.BlockSpec((tb, 1), lambda i, k: (i, 0))
        logits_spec = pl.BlockSpec((tb, tc), lambda i, k: (i, k))
        kernel = _make_online_kernel(has_weights, C)
        scratch = [pltpu.VMEM((tb, 1), jnp.float32)] * 3
        dims = ("parallel", "arbitrary")

    in_specs = [logits_spec, col] + ([col] if has_weights else [])

    fn = pl.pallas_call(
        kernel,
        out_shape=out_shape,
        grid_spec=pltpu.PrefetchScalarGridSpec(
            num_scalar_prefetch=0,
            grid=grid,
            in_specs=in_specs,
            out_specs=col,
            scratch_shapes=scratch,
        ),
        compiler_params=pltpu.CompilerParams(
            dimension_semantics=dims,
            vmem_limit_bytes=vmem_limit,
        ),
    )

    args = (outputs, targets2d) + ((weights2d,) if has_weights else ())
    return fn(*args).reshape(B)


# ---------------------------------------------------------------------------
# Reference & self-test
# ---------------------------------------------------------------------------

def _reference(outputs, targets, weights=None):
    # pure-JAX reference (matches torch CrossEntropyLoss(reduction='none'))
    logp = jax.nn.log_softmax(outputs.astype(jnp.float32), axis=-1)
    nll = -jnp.take_along_axis(logp, targets[:, None].astype(jnp.int32), axis=-1)[:, 0]
    if weights is None:
        return nll
    return weights.astype(jnp.float32) * nll


if __name__ == "__main__":
    key = jax.random.PRNGKey(0)
    ks = jax.random.split(key, 9)

    # 1) small f32, divisible batch (single-pass path, weighted + unweighted)
    B, C = 8, 32
    outputs = jax.random.normal(ks[0], (B, C), dtype=jnp.float32)
    targets = jax.random.randint(ks[1], (B,), 0, C, dtype=jnp.int32)
    weights = jax.random.uniform(ks[2], (B,), dtype=jnp.float32)

    loss_w = custom_outer_loss(outputs, targets, weights)
    jax.block_until_ready(loss_w)
    loss_u = custom_outer_loss(outputs, targets, None)
    jax.block_until_ready(loss_u)
    assert loss_w.shape == (B,) and loss_u.shape == (B,)
    assert jnp.allclose(loss_w, _reference(outputs, targets, weights), atol=1e-5, rtol=1e-5)
    assert jnp.allclose(loss_u, _reference(outputs, targets, None), atol=1e-5, rtol=1e-5)

    # 2) bf16 logits, ragged batch (partial last block, no wrapper pad)
    B2, C2 = 37, 96
    outputs2 = jax.random.normal(ks[3], (B2, C2), dtype=jnp.bfloat16)
    targets2 = jax.random.randint(ks[4], (B2,), 0, C2, dtype=jnp.int32)
    weights2 = jax.random.uniform(ks[5], (B2,), dtype=jnp.float32)
    loss2 = custom_outer_loss(outputs2, targets2, weights2)
    jax.block_until_ready(loss2)
    assert loss2.shape == (B2,)
    assert jnp.allclose(loss2, _reference(outputs2, targets2, weights2), atol=1e-4, rtol=1e-4)

    # 3) force the large-C online-softmax path (class chunks of 128, masked tail,
    #    ragged batch), weighted + unweighted
    B3, C3 = 20, 200
    outputs3 = jax.random.normal(ks[6], (B3, C3), dtype=jnp.float32)
    targets3 = jax.random.randint(ks[7], (B3,), 0, C3, dtype=jnp.int32)
    weights3 = jax.random.uniform(ks[8], (B3,), dtype=jnp.float32)
    loss3w = custom_outer_loss(outputs3, targets3, weights3, class_tile=128)
    jax.block_until_ready(loss3w)
    loss3u = custom_outer_loss(outputs3, targets3, None, class_tile=128)
    jax.block_until_ready(loss3u)
    assert loss3w.shape == (B3,) and loss3u.shape == (B3,)
    assert jnp.allclose(loss3w, _reference(outputs3, targets3, weights3), atol=1e-5, rtol=1e-5)
    assert jnp.allclose(loss3u, _reference(outputs3, targets3, None), atol=1e-5, rtol=1e-5)

    print("KERNEL_OK")
</pallas_src>

<mosaic_0001>
module attributes {stable_mosaic.version = 11 : i64} {
  func.func @kernel(%arg0: i32, %arg1: memref<8x32xf32, #tpu.memory_space<vmem>>, %arg2: memref<8x1xi32, #tpu.memory_space<vmem>>, %arg3: memref<8x1xf32, #tpu.memory_space<vmem>>, %arg4: memref<8x1xf32, #tpu.memory_space<vmem>>) attributes {dimension_semantics = [#tpu.dimension_semantics<parallel>], iteration_bounds = array<i64: 1>, scalar_prefetch = 0 : i64, scratch_operands = 0 : i64, tpu.core_type = #tpu.core_type<tc>, window_params = [{transform_indices = @transform_0, window_bounds = array<i64: 8, 32>}, {transform_indices = @transform_1, window_bounds = array<i64: 8, 1>}, {transform_indices = @transform_2, window_bounds = array<i64: 8, 1>}, {transform_indices = @transform_3, window_bounds = array<i64: 8, 1>}]} {
    %c0 = arith.constant 0 : index
    %c0_0 = arith.constant 0 : index
    %0 = vector.load %arg1[%c0, %c0_0] : memref<8x32xf32, #tpu.memory_space<vmem>>, vector<8x32xf32>
    %c0_1 = arith.constant 0 : index
    %c0_2 = arith.constant 0 : index
    %1 = vector.load %arg2[%c0_1, %c0_2] : memref<8x1xi32, #tpu.memory_space<vmem>>, vector<8x1xi32>
    %cst = arith.constant dense<0xFF800000> : vector<8xf32>
    %2 = vector.multi_reduction <maximumf>, %0, %cst [1] : vector<8x32xf32> to vector<8xf32>
    %3 = vector.shape_cast %2 : vector<8xf32> to vector<8x1xf32>
    %4 = vector.broadcast %3 : vector<8x1xf32> to vector<8x32xf32>
    %5 = arith.subf %0, %4 : vector<8x32xf32>
    %6 = math.exp %5 : vector<8x32xf32>
    %cst_3 = arith.constant dense<0.000000e+00> : vector<8xf32>
    %7 = vector.multi_reduction <add>, %6, %cst_3 [1] : vector<8x32xf32> to vector<8xf32>
    %8 = vector.shape_cast %7 : vector<8xf32> to vector<8x1xf32>
    %9 = math.log %8 : vector<8x1xf32>
    %10 = tpu.iota {dimensions = array<i32: 1>} : vector<8x32xi32>
    %11 = vector.broadcast %1 : vector<8x1xi32> to vector<8x32xi32>
    %12 = arith.cmpi eq, %10, %11 : vector<8x32xi32>
    %cst_4 = arith.constant 0.000000e+00 : f32
    %13 = vector.broadcast %cst_4 : f32 to vector<8x32xf32>
    %14 = arith.select %12, %5, %13 : vector<8x32xi1>, vector<8x32xf32>
    %cst_5 = arith.constant dense<0.000000e+00> : vector<8xf32>
    %15 = vector.multi_reduction <add>, %14, %cst_5 [1] : vector<8x32xf32> to vector<8xf32>
    %16 = vector.shape_cast %15 : vector<8xf32> to vector<8x1xf32>
    %17 = arith.subf %9, %16 : vector<8x1xf32>
    %c0_6 = arith.constant 0 : index
    %c0_7 = arith.constant 0 : index
    %18 = vector.load %arg3[%c0_6, %c0_7] : memref<8x1xf32, #tpu.memory_space<vmem>>, vector<8x1xf32>
    %19 = arith.mulf %17, %18 : vector<8x1xf32>
    %c0_8 = arith.constant 0 : index
    %c0_9 = arith.constant 0 : index
    %20 = vector.load %arg4[%c0_8, %c0_9] : memref<8x1xf32, #tpu.memory_space<vmem>>, vector<8x1xf32>
    tpu.vector_store %arg4[%c0_8, %c0_9], %19 {strides = array<i32>} : memref<8x1xf32, #tpu.memory_space<vmem>>, vector<8x1xf32>,
    return
  }
  func.func @transform_0(%arg0: i32) -> (i32, i32) {
    %c0_i32 = arith.constant 0 : i32
    %c0_i32_0 = arith.constant 0 : i32
    return %arg0, %c0_i32 : i32, i32
  }
  func.func @transform_1(%arg0: i32) -> (i32, i32) {
    %c0_i32 = arith.constant 0 : i32
    %c0_i32_0 = arith.constant 0 : i32
    return %arg0, %c0_i32 : i32, i32
  }
  func.func @transform_2(%arg0: i32) -> (i32, i32) {
    %c0_i32 = arith.constant 0 : i32
    %c0_i32_0 = arith.constant 0 : i32
    return %arg0, %c0_i32 : i32, i32
  }
  func.func @transform_3(%arg0: i32) -> (i32, i32) {
    %c0_i32 = arith.constant 0 : i32
    %c0_i32_0 = arith.constant 0 : i32
    return %arg0, %c0_i32 : i32, i32
  }
}

</mosaic_0001>

<bundles_post_ra>
// kernel: tpu_custom_call.1
= control target key start
LH: loop header
LB: loop body
LE: loop exit
PB: predicated region body
PF: predicated region fallthrough
CT: control target
= control target key end

     0   :  { %vm16_vm0 = vcmask 261120   ;;  %v53_v1 = vmov 0   ;;  %v28_v7 = vlaneseq  ;;  %vm41_vm2 = vcmask 7168   ;;  %s89_s0 = inlined_call_operand.vmem [shape: f32[8,32], index: 0, kind: input, shape index: {}]   ;;  %s90_s1 = inlined_call_operand.vmem [shape: s32[8,1], index: 1, kind: input, shape index: {}]   ;;  %s91_s2 = inlined_call_operand.vmem [shape: f32[8,1], index: 2, kind: input, shape index: {}]   ;;  %s92_s3 = inlined_call_operand.vmem [shape: f32[8,1], index: 3, kind: output, shape index: {}]  }
   0x1   :  { %v14_v0 = vld [vmem:[%s89_s0] sm:$0xff]  ;;  %48 = vset.pattern.permute.xlu0 %v53_v1 }
   0x2   :  { %v17_v2 = vsel %vm16_vm0, %v14_v0, -inf  ;;  %v15_v3 = vld [vmem:[%s90_s1] sm:$0xff]  ;;  %v29_v8 = vand.u32 127, %v28_v7 }
   0x3   :  { %18 = vmax.xlane.f32.xlu0 %v17_v2  ;;  %v39_v17 = vld [vmem:[%s91_s2] sm:$0xff] }
  0x19   :  { %31 = vperm.xlu0 %48, %v15_v3  }
  0x90   :  { %v19_v4 = vpop.xlane.xlu0 %18 }
  0x91   :  { %v20_v5 = vsub.f32 %v14_v0, %v19_v4 }
  0x93   :  { %v21_v6 = vmul.f32 1.442695, %v20_v5 }
  0x95   :  { %49 = vpow2.f32 %v21_v6 }
  0x98   :  { %v32_v9 = vpop.permute.xlu0 %31 }
  0x99   :  { %vm33_vm1 = vcmp.eq.s32.totalorder %v29_v8, %v32_v9 }
  0x9a   :  { %v34_v12 = vsel %vm33_vm1, %v20_v5, 0.0 }
  0x9b   :  { %v35_v13 = vsel %vm16_vm0, %v34_v12, 0.0 }
  0x9f   :  { %v50_v10 = vpop.eup %49 }
  0xa0   :  { %v23_v11 = vsel %vm16_vm0, %v50_v10, 0.0 }
  0xa1   :  { %24 = vadd.xlane.f32.xlu1 %v23_v11 }
  0xa5   :  { %36 = vadd.xlane.f32.xlu1 %v35_v13 }
 0x12e   :  { %v25_v14 = vpop.xlane.xlu1 %24 }
 0x12f   :  { %51 = vlog2.f32 %v25_v14 }
 0x132   :  { %v37_v18 = vpop.xlane.xlu1 %36 }
 0x139   :  { %v52_v15 = vpop.eup %51 }
 0x13a   :  { %v27_v16 = vmul.f32 0.6931472, %v52_v15 }
 0x13c   :  { %v38_v19 = vsub.f32 %v27_v16, %v37_v18 }
 0x13e   :  { %v40_v20 = vmul.f32 %v39_v17, %v38_v19 }
 0x140   :  { %42 = vst.msk [vmem:[%s92_s3] sm:$0xff] %vm41_vm2, %v40_v20 }

</bundles_post_ra>
